<compile_context>
chip_gen: v7x
topology: tpu7x:2x2x1
jax: 0.10.0
libtpu: 0.0.40
codegen_flags: <defaults>
</compile_context>

<pallas_src>
import functools

import numpy as np

import jax
import jax.numpy as jnp
from jax.experimental import pallas as pl
from jax.experimental.pallas import tpu as pltpu


# ----------------------------------------------------------------------------
# Helpers
# ----------------------------------------------------------------------------
def _round_up(x, m):
    return (x + m - 1) // m * m


def _pick_row_tile(H, W, target_rows=256, min_tiles=2):
    """Largest divisor TH of H with TH*W <= target_rows (matmul M per step),
    preferring >= min_tiles row tiles per image so both v7x TensorCores get
    work even at batch 1."""
    cands = [th for th in range(1, H + 1) if H % th == 0 and th * W <= target_rows]
    if not cands:
        return 1
    multi = [th for th in cands if H // th >= min_tiles]
    return max(multi) if multi else max(cands)


def _resident_spec(block_shape, index_map):
    """BlockSpec for operands whose block index never changes: request a
    single pipeline buffer (default double-buffering is pure VMEM waste here).
    Falls back to a plain BlockSpec if pipeline_mode is unavailable."""
    if hasattr(pl, "Buffered"):
        try:
            return pl.BlockSpec(block_shape, index_map, pipeline_mode=pl.Buffered(1))
        except TypeError:
            pass
    return pl.BlockSpec(block_shape, index_map)


def _vmem_limit_bytes():
    """Generation-aware VMEM limit: ~3/4 of physical, capped at 96 MiB."""
    try:
        cap = pltpu.get_tpu_info().vmem_capacity_bytes
    except Exception:
        cap = 64 * 1024 * 1024
    return int(min(cap * 3 // 4, 96 * 1024 * 1024))


# ----------------------------------------------------------------------------
# Pallas kernel: fused dilated conv (single deep-contraction dot) + bias + ReLU
# ----------------------------------------------------------------------------
def _conv_bn_relu_kernel(x_ref, w_ref, b_ref, o_ref, *, TH, W, K, d):
    # x_ref: (1, Hp, Wp, Cin)   bf16  whole padded image of the current batch
    # w_ref: (K*K*Cin, Cpad)    bf16  im2col weights, BN scale folded in
    # b_ref: (1, Cpad)          f32   folded BN bias (zero in pad channels)
    # o_ref: (1, TH*W, Cpad)          current row tile (output rows flattened)
    t = pl.program_id(1)
    Cin = x_ref.shape[-1]
    row0 = pl.multiple_of(t * TH, TH)

    # Build the fused-tap operand in VMEM: the K*K shifted windows are
    # concatenated along the channel axis -> ONE deep-contraction matmul
    # instead of K*K tiny dots + accumulator round-trips.
    taps = []
    for kh in range(K):
        rows = x_ref[0, pl.ds(row0 + kh * d, TH), :, :]         # (TH, Wp, Cin)
        for kw in range(K):
            taps.append(rows[:, kw * d:kw * d + W, :])           # (TH, W, Cin)
    patches = jnp.concatenate(taps, axis=-1)                     # (TH, W, K*K*Cin)
    lhs = patches.reshape(TH * W, K * K * Cin)

    acc = jnp.dot(lhs, w_ref[...], preferred_element_type=jnp.float32)
    y = jnp.maximum(acc + b_ref[...], 0.0)                       # bias + ReLU (f32)
    o_ref[0] = y.astype(o_ref.dtype)


def conv_bn_relu(x, params, dilation=1, row_tile=None, out_dtype=jnp.float32):
    """Fused Conv(KxK, bias=False) + folded BatchNorm + ReLU via one pallas_call.

    x: (N, H, W, Cin) float32, NHWC.  Returns (N, H, W, Cpad) with Cout padded
    to a multiple of 128 (pad channels are exactly zero); a full network would
    keep channels padded end-to-end instead of slicing.
    """
    N, H, W, Cin = x.shape
    k = params["ksize"]
    d = dilation
    pad = k // 2 if d == 1 else d                   # module's padding rule
    # Same-size output requires 2*pad == (k-1)*d (true for k=3, any dilation).
    assert 2 * pad == (k - 1) * d, "padding rule is not 'same' for this config"

    w_mat = params["w_mat"]                         # (k*k*Cin, Cpad) bf16
    bias = params["bias_pad"]                       # (1, Cpad) f32
    Cpad = w_mat.shape[-1]

    # Spatial zero-pad + bf16 cast (single XLA pass; conv halo).
    xp = jnp.pad(x, ((0, 0), (pad, pad), (pad, pad), (0, 0))).astype(jnp.bfloat16)
    Hp, Wp = H + 2 * pad, W + 2 * pad

    TH = row_tile if row_tile is not None else _pick_row_tile(H, W)
    assert H % TH == 0, "row tile must divide H"
    assert (TH * W) % 8 == 0 or H // TH == 1, "row tile * W must be sublane aligned"
    n_tiles = H // TH

    flops = 2 * N * H * W * k * k * Cin * params["cout"]
    bytes_accessed = (xp.size * 2 + w_mat.size * 2 + bias.size * 4
                      + N * H * W * Cpad * jnp.dtype(out_dtype).itemsize)

    kernel = functools.partial(_conv_bn_relu_kernel, TH=TH, W=W, K=k, d=d)
    out = pl.pallas_call(
        kernel,
        out_shape=jax.ShapeDtypeStruct((N, H * W, Cpad), out_dtype),
        grid=(N, n_tiles),
        in_specs=[
            # Whole padded image of batch b: same block index for every row
            # tile of that batch element -> stays resident, fetched once.
            pl.BlockSpec((1, Hp, Wp, Cin), lambda b, t: (b, 0, 0, 0)),
            # Weights / bias: constant block index -> resident, single-buffered.
            _resident_spec((k * k * Cin, Cpad), lambda b, t: (0, 0)),
            _resident_spec((1, Cpad), lambda b, t: (0, 0)),
        ],
        out_specs=pl.BlockSpec((1, TH * W, Cpad), lambda b, t: (b, t, 0)),
        compiler_params=pltpu.CompilerParams(
            dimension_semantics=("parallel", "parallel"),
            vmem_limit_bytes=_vmem_limit_bytes(),
        ),
        cost_estimate=pl.CostEstimate(flops=flops, transcendentals=0,
                                      bytes_accessed=bytes_accessed),
    )(xp, w_mat, bias)
    # Free reshape of a contiguous array; channel pad is kept (no HBM slice).
    return out.reshape(N, H, W, Cpad)


# ----------------------------------------------------------------------------
# Pure-JAX reference (full f32) for the correctness check
# ----------------------------------------------------------------------------
def conv_bn_relu_ref(x, params, dilation=1):
    d = dilation
    k = params["ksize"]
    pad = k // 2 if d == 1 else d
    y = jax.lax.conv_general_dilated(
        x, params["w"], window_strides=(1, 1),
        padding=[(pad, pad), (pad, pad)], rhs_dilation=(d, d),
        dimension_numbers=("NHWC", "OIHW", "NHWC"))
    return jnp.maximum(y * params["scale"] + params["bias"], 0.0)


# ----------------------------------------------------------------------------
# Parameter init (deterministic synthetic Conv + BN, folded for the kernel)
# ----------------------------------------------------------------------------
def init_conv_bn_params(key, cin, cout, ksize=3):
    k1, k2, k3, k4, k5 = jax.random.split(key, 5)
    w = jax.random.normal(k1, (cout, cin, ksize, ksize), jnp.float32) \
        / np.sqrt(ksize * ksize * cin)
    gamma = jax.random.uniform(k2, (cout,), minval=0.5, maxval=1.5)
    beta = jax.random.normal(k3, (cout,), jnp.float32) * 0.1
    rmean = jax.random.normal(k4, (cout,), jnp.float32) * 0.1
    rvar = jax.random.uniform(k5, (cout,), minval=0.5, maxval=1.5)
    eps = 1e-5
    scale = gamma / jnp.sqrt(rvar + eps)            # eval-mode BN fold
    bias = beta - rmean * scale

    cpad = _round_up(cout, 128)                     # lane-dense output channels
    # Fold BN scale into the conv weights; im2col layout (kh, kw, cin) x cpad,
    # matching the kernel's tap concatenation order (kh-major, kw, cin-minor).
    w_sc = w * scale[:, None, None, None]           # (cout, cin, kh, kw)
    w_mat = jnp.transpose(w_sc, (2, 3, 1, 0)).reshape(ksize * ksize * cin, cout)
    w_mat = jnp.pad(w_mat, ((0, 0), (0, cpad - cout))).astype(jnp.bfloat16)
    bias_pad = jnp.pad(bias, (0, cpad - cout)).reshape(1, cpad).astype(jnp.float32)

    return {"w": w, "scale": scale, "bias": bias,
            "w_mat": w_mat, "bias_pad": bias_pad,
            "cout": cout, "ksize": ksize}


# ----------------------------------------------------------------------------
# Driver
# ----------------------------------------------------------------------------
if __name__ == "__main__":
    N, Cin, H, W, Cout = 2, 4, 16, 16, 8

    key = jax.random.PRNGKey(0)
    kx, kp1, kp2 = jax.random.split(key, 3)
    x_nchw = jax.random.normal(kx, (N, Cin, H, W), jnp.float32)   # PyTorch NCHW
    x = jnp.transpose(x_nchw, (0, 2, 3, 1))                       # NHWC for TPU

    # Config 1: ConvBNReLU(4, 8, kernel_size=3, dilation=1), f32 output.
    p1 = init_conv_bn_params(kp1, Cin, Cout, ksize=3)
    Cpad = p1["w_mat"].shape[-1]
    fwd1 = jax.jit(lambda xx: conv_bn_relu(xx, p1, dilation=1))
    out1 = jax.block_until_ready(fwd1(x))
    assert out1.shape == (N, H, W, Cpad)
    ref1 = conv_bn_relu_ref(x, p1, dilation=1)
    # bf16 MXU inputs vs full-f32 reference -> ~1e-3 scale rounding noise.
    np.testing.assert_allclose(np.asarray(out1[..., :Cout]), np.asarray(ref1),
                               rtol=2e-2, atol=2e-2)
    assert not np.any(np.asarray(out1[..., Cout:]))   # pad channels exactly 0

    # Config 2: dilation=2 (padding=dilation branch), explicit small row tile
    # (exercises the multi-tile grid path), bf16 output.
    p2 = init_conv_bn_params(kp2, Cin, Cout, ksize=3)
    fwd2 = jax.jit(lambda xx: conv_bn_relu(xx, p2, dilation=2, row_tile=4,
                                           out_dtype=jnp.bfloat16))
    out2 = jax.block_until_ready(fwd2(x))
    assert out2.shape == (N, H, W, Cpad)
    ref2 = conv_bn_relu_ref(x, p2, dilation=2)
    np.testing.assert_allclose(np.asarray(out2[..., :Cout].astype(jnp.float32)),
                               np.asarray(ref2), rtol=4e-2, atol=4e-2)

    print("KERNEL_OK")
</pallas_src>

<mosaic_0001>
module attributes {stable_mosaic.version = 11 : i64} {
  func.func @_conv_bn_relu_kernel(%arg0: i32, %arg1: i32, %arg2: memref<1x18x18x4xbf16, #tpu.memory_space<vmem>>, %arg3: memref<36x128xbf16, #tpu.memory_space<vmem>>, %arg4: memref<1x128xf32, #tpu.memory_space<vmem>>, %arg5: memref<1x128x128xf32, #tpu.memory_space<vmem>>) attributes {dimension_semantics = [#tpu.dimension_semantics<parallel>, #tpu.dimension_semantics<parallel>], iteration_bounds = array<i64: 2, 2>, scalar_prefetch = 0 : i64, scratch_operands = 0 : i64, tpu.core_type = #tpu.core_type<tc>, window_params = [{transform_indices = @transform_0, window_bounds = array<i64: 1, 18, 18, 4>}, {pipeline_mode = #tpu.pipeline_mode<synchronous>, transform_indices = @transform_1, window_bounds = array<i64: 36, 128>}, {pipeline_mode = #tpu.pipeline_mode<synchronous>, transform_indices = @transform_2, window_bounds = array<i64: 1, 128>}, {transform_indices = @transform_3, window_bounds = array<i64: 1, 128, 128>}]} {
    %c8_i32 = arith.constant 8 : i32
    %0 = arith.muli %arg1, %c8_i32 : i32
    %1 = tpu.assume_multiple %0, 8 : i32
    %c0_i32 = arith.constant 0 : i32
    %2 = arith.addi %1, %c0_i32 : i32
    %c0 = arith.constant 0 : index
    %3 = arith.index_cast %2 : i32 to index
    %c0_0 = arith.constant 0 : index
    %c0_1 = arith.constant 0 : index
    %4 = vector.load %arg2[%c0, %3, %c0_0, %c0_1] : memref<1x18x18x4xbf16, #tpu.memory_space<vmem>>, vector<1x8x18x4xbf16>
    %5 = vector.shape_cast %4 : vector<1x8x18x4xbf16> to vector<8x18x4xbf16>
    %6 = vector.extract_strided_slice %5 {offsets = [0, 0, 0], sizes = [8, 16, 4], strides = [1, 1, 1]} : vector<8x18x4xbf16> to vector<8x16x4xbf16>
    %7 = vector.extract_strided_slice %5 {offsets = [0, 1, 0], sizes = [8, 16, 4], strides = [1, 1, 1]} : vector<8x18x4xbf16> to vector<8x16x4xbf16>
    %8 = vector.extract_strided_slice %5 {offsets = [0, 2, 0], sizes = [8, 16, 4], strides = [1, 1, 1]} : vector<8x18x4xbf16> to vector<8x16x4xbf16>
    %c1_i32 = arith.constant 1 : i32
    %9 = arith.addi %1, %c1_i32 : i32
    %c0_2 = arith.constant 0 : index
    %10 = arith.index_cast %9 : i32 to index
    %c0_3 = arith.constant 0 : index
    %c0_4 = arith.constant 0 : index
    %11 = vector.load %arg2[%c0_2, %10, %c0_3, %c0_4] : memref<1x18x18x4xbf16, #tpu.memory_space<vmem>>, vector<1x8x18x4xbf16>
    %12 = vector.shape_cast %11 : vector<1x8x18x4xbf16> to vector<8x18x4xbf16>
    %13 = vector.extract_strided_slice %12 {offsets = [0, 0, 0], sizes = [8, 16, 4], strides = [1, 1, 1]} : vector<8x18x4xbf16> to vector<8x16x4xbf16>
    %14 = vector.extract_strided_slice %12 {offsets = [0, 1, 0], sizes = [8, 16, 4], strides = [1, 1, 1]} : vector<8x18x4xbf16> to vector<8x16x4xbf16>
    %15 = vector.extract_strided_slice %12 {offsets = [0, 2, 0], sizes = [8, 16, 4], strides = [1, 1, 1]} : vector<8x18x4xbf16> to vector<8x16x4xbf16>
    %c2_i32 = arith.constant 2 : i32
    %16 = arith.addi %1, %c2_i32 : i32
    %c0_5 = arith.constant 0 : index
    %17 = arith.index_cast %16 : i32 to index
    %c0_6 = arith.constant 0 : index
    %c0_7 = arith.constant 0 : index
    %18 = vector.load %arg2[%c0_5, %17, %c0_6, %c0_7] : memref<1x18x18x4xbf16, #tpu.memory_space<vmem>>, vector<1x8x18x4xbf16>
    %19 = vector.shape_cast %18 : vector<1x8x18x4xbf16> to vector<8x18x4xbf16>
    %20 = vector.extract_strided_slice %19 {offsets = [0, 0, 0], sizes = [8, 16, 4], strides = [1, 1, 1]} : vector<8x18x4xbf16> to vector<8x16x4xbf16>
    %21 = vector.extract_strided_slice %19 {offsets = [0, 1, 0], sizes = [8, 16, 4], strides = [1, 1, 1]} : vector<8x18x4xbf16> to vector<8x16x4xbf16>
    %22 = vector.extract_strided_slice %19 {offsets = [0, 2, 0], sizes = [8, 16, 4], strides = [1, 1, 1]} : vector<8x18x4xbf16> to vector<8x16x4xbf16>
    %23 = tpu.concatenate %6, %7, %8, %13, %14, %15, %20, %21, %22 in 2 : vector<8x16x4xbf16>, vector<8x16x4xbf16>, vector<8x16x4xbf16>, vector<8x16x4xbf16>, vector<8x16x4xbf16>, vector<8x16x4xbf16>, vector<8x16x4xbf16>, vector<8x16x4xbf16>, vector<8x16x4xbf16> -> vector<8x16x36xbf16>
    %24 = vector.shape_cast %23 : vector<8x16x36xbf16> to vector<128x36xbf16>
    %c0_8 = arith.constant 0 : index
    %c0_9 = arith.constant 0 : index
    %25 = vector.load %arg3[%c0_8, %c0_9] : memref<36x128xbf16, #tpu.memory_space<vmem>>, vector<36x128xbf16>
    %cst = arith.constant dense<0.000000e+00> : vector<128x128xf32>
    %26 = tpu.matmul %24, %25, %cst {dimension_numbers = #tpu.dot_dimension_numbers<[1], [0], [0], [1], [0, 0, 1, 1], [], []>} : vector<128x36xbf16>, vector<36x128xbf16>, vector<128x128xf32> -> vector<128x128xf32>
    %c0_10 = arith.constant 0 : index
    %c0_11 = arith.constant 0 : index
    %27 = vector.load %arg4[%c0_10, %c0_11] : memref<1x128xf32, #tpu.memory_space<vmem>>, vector<1x128xf32>
    %28 = vector.broadcast %27 : vector<1x128xf32> to vector<128x128xf32>
    %29 = arith.addf %26, %28 : vector<128x128xf32>
    %cst_12 = arith.constant 0.000000e+00 : f32
    %30 = vector.broadcast %cst_12 : f32 to vector<128x128xf32>
    %31 = arith.maximumf %29, %30 : vector<128x128xf32>
    %c0_13 = arith.constant 0 : index
    %c0_14 = arith.constant 0 : index
    %c0_15 = arith.constant 0 : index
    %32 = vector.load %arg5[%c0_13, %c0_14, %c0_15] : memref<1x128x128xf32, #tpu.memory_space<vmem>>, vector<1x128x128xf32>
    %33 = vector.shape_cast %32 : vector<1x128x128xf32> to vector<128x128xf32>
    %34 = vector.shape_cast %31 : vector<128x128xf32> to vector<1x128x128xf32>
    tpu.vector_store %arg5[%c0_13, %c0_14, %c0_15], %34 {strides = array<i32>} : memref<1x128x128xf32, #tpu.memory_space<vmem>>, vector<1x128x128xf32>,
    return
  }
  func.func @transform_0(%arg0: i32, %arg1: i32) -> (i32, i32, i32, i32) {
    %c0_i32 = arith.constant 0 : i32
    %c0_i32_0 = arith.constant 0 : i32
    %c0_i32_1 = arith.constant 0 : i32
    %c0_i32_2 = arith.constant 0 : i32
    return %arg0, %c0_i32, %c0_i32_0, %c0_i32_1 : i32, i32, i32, i32
  }
  func.func @transform_1(%arg0: i32, %arg1: i32) -> (i32, i32) {
    %c0_i32 = arith.constant 0 : i32
    %c0_i32_0 = arith.constant 0 : i32
    %c0_i32_1 = arith.constant 0 : i32
    return %c0_i32, %c0_i32_0 : i32, i32
  }
  func.func @transform_2(%arg0: i32, %arg1: i32) -> (i32, i32) {
    %c0_i32 = arith.constant 0 : i32
    %c0_i32_0 = arith.constant 0 : i32
    %c0_i32_1 = arith.constant 0 : i32
    return %c0_i32, %c0_i32_0 : i32, i32
  }
  func.func @transform_3(%arg0: i32, %arg1: i32) -> (i32, i32, i32) {
    %c0_i32 = arith.constant 0 : i32
    %c0_i32_0 = arith.constant 0 : i32
    return %arg0, %arg1, %c0_i32 : i32, i32, i32
  }
}

</mosaic_0001>

<bundles_post_ra>
// kernel: _lambda_.1
= control target key start
LH: loop header
LB: loop body
LE: loop exit
PB: predicated region body
PF: predicated region fallthrough
CT: control target
= control target key end

     0   :  { %8 = vsyncpa [#allocation3], 0  ;;  %s2354_s0 = inlined_call_operand.vmem [shape: bf16[2,18,18,4], index: 0, kind: input, shape index: {}]   ;;  %s2355_s1 = inlined_call_operand.vmem [shape: bf16[36,128], index: 1, kind: input, shape index: {}]   ;;  %s2356_s2 = inlined_call_operand.vmem [shape: f32[1,128], index: 2, kind: input, shape index: {}]   ;;  %s2357_s3 = inlined_call_operand.hbm [shape: f32[2,256,128], index: 3, kind: output, shape index: {}]  }
   0x1   :  { %10 = vsyncpa [#allocation3 + $0x1], 0  ;;  %s1794_s12 = smov 0   ;;  %s1796_s13 = smov 0  }
   0x2   :  { %s1798_s14 = smov 0   ;;  %s1800_s15 = smov 0  }
   0x3   :  { %s1802_s16 = smov 0   ;;  %s1804_s17 = smov 0  }
   0x4   :  { %s1806_s18 = smov 0   ;;  %s1808_s19 = smov 0  }
   0x5 LB: > { %s1366_s20 = sadd.s32 4294967295, %s1762_s19   ;;  %s1367_s21 = sadd.s32 4294967294, %s1762_s19   ;;  %s1762_s19 = sphi %s1808_s19, %s16_s19   ;;  %s1758_s18 = sphi %s1806_s18, %s2366_s18   ;;  %s1754_s17 = sphi %s1804_s17, %s2365_s17   ;;  %s1750_s16 = sphi %s1802_s16, %s2364_s16   ;;  %s1746_s15 = sphi %s1800_s15, %s2363_s15   ;;  %s1742_s14 = sphi %s1798_s14, %s2362_s14   ;;  %s1738_s13 = sphi %s1796_s13, %s2361_s13   ;;  %s1734_s12 = sphi %s1794_s12, %s2360_s12  }
   0x6   : > { %s25_s22 = sadd.s32 1, %s1754_s17  ;;  %s28_s23 = sadd.s32 1, %s1758_s18 }
   0x7   : > { %p26_p0 = scmp.ge.s32.totalorder %s25_s22, 2  ;;  %p115_p1 = scmp.ne.s32.totalorder %s1742_s14, %s1738_s13 }
   0x8   : > { %p116_p2 = scmp.eq.s32.totalorder %s1366_s20, 3  ;;  %p121_p5 = scmp.ne.s32.totalorder %s1738_s13, %s1734_s12 }
   0x9   : > { %s2368_s22 = smov (%p26_p0, %s25_s22), 0  ;;  %s2370_s23 = smov (!%p26_p0, %s28_s23), %s1758_s18 }
   0xa   : > { %s101_s24 = ssub.s32 %s1754_s17, %s2368_s22  ;;  %p1845_p3 = por %p116_p2, %p115_p1 }
   0xb   : > { %p30_p4 = scmp.ge.s32.totalorder %s2370_s23, 2  ;;  %p122_p6 = scmp.eq.s32.totalorder %s1367_s21, 3 }
   0xc   : > { %p1370_p7 = scmp.ge.s32.totalorder %s1762_s19, 1  ;;  %p154_p9 = scmp.lt.s32.totalorder %s1762_s19, 5 }
   0xd   : > { %s2372_s23 = smov (%p30_p4, %s2370_s23), 0  ;;  %p1854_p8 = por %p122_p6, %p121_p5 }
   0xe   : > { %s100_s27 = ssub.s32 %s1758_s18, %s2372_s23  ;;  %s105_s28 = sadd.s32 1, %s1742_s14 }
   0xf   : > { %s102_s29 = sor.u32 %s101_s24, %s100_s27  ;;  %p155_p10 = pnand %p1370_p7, %p154_p9 }
  0x10   : > { %p103_p11 = scmp.eq.s32.totalorder %s102_s29, 0  ;;  %p178_p12 = scmp.lt.s32.totalorder (!%p155_p10), %s1750_s16, 1  ;;  %vm446_vm0 = vcmask (!%p155_p10), 1046528   ;;  %vm333_vm1 = vsmask.f32 (!%p155_p10), 7424  ;;  %vm1131_vm2 = vcmask (!%p155_p10), 1041408  }
  0x11   : > { %158 = sbr.rel (%p155_p10) target bundleno = 506 (0x1fa), region = 32  ;;  %s1764_s11 = smov (!%p155_p10), 12   ;;  %vm951_vm3 = vcmask (!%p155_p10), 31744   ;;  %vm968_vm4 = vcmask (!%p155_p10), 64512   ;;  %vm985_vm5 = vcmask (!%p155_p10), 97280   ;;  %vm1002_vm6 = vcmask (!%p155_p10), 130048  }
  0x12   : > { %s1863_s30 = scalar_select %p103_p11, %s1742_s14, %s105_s28  }
  0x13   : > { %s1494_s5 = smul.u32 (!%p155_p10), 96, %s1746_s15  ;;  %s1765_s20 = smov (!%p155_p10), 8   ;;  %vm1019_vm7 = vcmask (!%p155_p10), 162816   ;;  %vm1036_vm8 = vcmask (!%p155_p10), 195584   ;;  %vm1053_vm9 = vcmask (!%p155_p10), 228352   ;;  %vm1070_vm10 = vcmask (!%p155_p10), 261120  }
  0x14   : > { %s1766_s21 = smov (!%p155_p10), 4   ;;  %s1767_s24 = smov (!%p155_p10), 16   ;;  %vm1114_vm11 = vcmask (!%p155_p10), 293888  }
  0x15   : > { %s1768_s27 = smov (!%p155_p10), 20   ;;  %s1769_s28 = smov (!%p155_p10), 24  }
  0x16   : > { %s1770_s29 = smov (!%p155_p10), 28   ;;  %s1771_s8 = smov (!%p155_p10), 32  }
  0x18   : > { %s179_s4 = scalar_select %p178_p12, %s1750_s16, 1 }
  0x1a   : > { %s1536_s6 = smul.u32 216, %s179_s4 }
  0x1c   : > { %s182_s9 = scalar_lea.vmem %s2354_s0, %s1536_s6 }
  0x1d   : > { %s1871_s10 = scalar_lea.vmem %s182_s9, %s1494_s5 }
  0x1e   : > { %v1874_v0 = vld [vmem:[%s1871_s10 + $0x3c] sm:$0xff]   ;;  %v1877_v1 = vld [vmem:[%s1871_s10 + $0xc] sm:$0xff]   ;;  %v1620_v3 = vld [vmem:[%s1871_s10 + $0x38] ss:$0 sps:$4 sm:$0x11]  }
  0x1f   : > { %535 = vrot.lane.b32.xlu1 %v1874_v0, %s1764_s11  ;;  %527 = vrot.lane.b32.xlu0 %v1877_v1, %s1764_s11  ;;  %v1884_v2 = vld [vmem:[%s1871_s10 + $0x30] sm:$0xff]   ;;  %v1888_v4 = vld [vmem:[%s1871_s10] sm:$0xff]   ;;  %v616_v5 = vshrl.u32 %v1874_v0, 16  ;;  %v460_v7 = vrot.slane %v1620_v3, 1  ;;  %v390_v43 = vshll.u32 %v1620_v3, 16  ;;  %v618_v48 = vshll.u32 %v1874_v0, 16 }
  0x20   : > { %v459_v6 = vrot.slane %v1884_v2, 1  ;;  %v1622_v8 = vld [vmem:[%s1871_s10 + $0x8] ss:$0 sps:$4 sm:$0x11]   ;;  %v1894_v9 = vld [vmem:[%s1871_s10 + $0x3c] sm:$0xff]   ;;  %v447_v10 = vrot.slane %v1888_v4, 1 }
  0x21   : > { %v1898_v11 = vld [vmem:[%s1871_s10 + $0xc] sm:$0xff]   ;;  %v448_v13 = vrot.slane %v1622_v8, 1  ;;  %v1624_v14 = vld [vmem:[%s1871_s10 + $0x44] ss:$0 sps:$4 sm:$0x11]   ;;  %v462_v15 = vrot.slane %v1894_v9, 1 }
  0x22   : > { %v461_v12 = vsel %vm446_vm0, %v459_v6, %v460_v7  ;;  %v450_v16 = vrot.slane %v1898_v11, 1  ;;  %v463_v18 = vrot.slane %v1624_v14, 1  ;;  %v1626_v19 = vld [vmem:[%s1871_s10 + $0x14] ss:$0 sps:$4 sm:$0x11]   ;;  %v347_v20 = vshrl.u32 %v1898_v11, 16 }
  0x23   : > { %479 = vrot.lane.b32.xlu1 %v461_v12, %s1765_s20  ;;  %v449_v17 = vsel %vm446_vm0, %v447_v10, %v448_v13  ;;  %v349_v21 = vshll.u32 %v1898_v11, 16  ;;  %v335_v22 = vshrl.u32 %v1888_v4, 16  ;;  %v337_v23 = vshll.u32 %v1888_v4, 16  ;;  %v1918_v36 = vld [vmem:[%s1871_s10 + $0x48] sm:$0xff]   ;;  %v1930_v52 = vld [vmem:[%s1871_s10 + $0x18] sm:$0xff]  }
  0x24   : > { %471 = vrot.lane.b32.xlu0 %v449_v17, %s1765_s20  ;;  %v464_v24 = vsel %vm446_vm0, %v462_v15, %v463_v18  ;;  %v451_v25 = vrot.slane %v1626_v19, 1  ;;  %v354_v26 = vshll.u32 %v1626_v19, 16  ;;  %v342_v27 = vshll.u32 %v1622_v8, 16  ;;  %v1629_v44 = vld [vmem:[%s1871_s10 + $0x44] ss:$0 sps:$4 sm:$0x11]  }
  0x25   : > { %v351_v28 = vrot.slane %v349_v21, 1  ;;  %v339_v29 = vrot.slane %v337_v23, 1  ;;  %v395_v30 = vshrl.u32 %v1894_v9, 16  ;;  %v397_v31 = vshll.u32 %v1894_v9, 16 }
  0x26   : > { %v452_v32 = vsel %vm446_vm0, %v450_v16, %v451_v25  ;;  %v356_v33 = vrot.slane %v354_v26, 1  ;;  %v344_v34 = vrot.slane %v342_v27, 1  ;;  %v402_v35 = vshll.u32 %v1624_v14, 16  ;;  %v1630_v49 = vld [vmem:[%s1871_s10 + $0x14] ss:$0 sps:$4 sm:$0x11]  }
  0x27   : > { %481 = vrot.lane.b32.xlu1 %v464_v24, %s1765_s20  ;;  %v352_v37 = vor.u32 %v351_v28, %v347_v20  ;;  %v340_v38 = vor.u32 %v339_v29, %v335_v22  ;;  %v399_v39 = vrot.slane %v397_v31, 1  ;;  %v383_v40 = vshrl.u32 %v1884_v2, 16  ;;  %v1631_v58 = vld [vmem:[%s1871_s10 + $0x50] ss:$0 sps:$4 sm:$0x11]  }
  0x28   : > { %473 = vrot.lane.b32.xlu0 %v452_v32, %s1765_s20  ;;  %v404_v41 = vrot.slane %v402_v35, 1  ;;  %v385_v42 = vshll.u32 %v1884_v2, 16  ;;  %v392_v51 = vrot.slane %v390_v43, 1  ;;  %v623_v53 = vshll.u32 %v1629_v44, 16 }
  0x29   : > { %v357_v45 = vsel %vm333_vm1, %v352_v37, %v356_v33  ;;  %v345_v46 = vsel %vm333_vm1, %v340_v38, %v344_v34  ;;  %v400_v47 = vor.u32 %v399_v39, %v395_v30  ;;  %v620_v55 = vrot.slane %v618_v48, 1  ;;  %v1632_v62 = vld [vmem:[%s1871_s10 + $0x20] ss:$0 sps:$4 sm:$0x11]   ;;  %v1960_v30 = vld [vmem:[%s1871_s10 + $0x48] sm:$0xff]   ;;  %v1975_v38 = vld [vmem:[%s1871_s10 + $0x54] sm:$0xff]  }
  0x2a   : > { %v387_v50 = vrot.slane %v385_v42, 1  ;;  %v570_v56 = vshll.u32 %v1877_v1, 16  ;;  %v575_v57 = vshll.u32 %v1630_v49, 16  ;;  %v568_v60 = vshrl.u32 %v1877_v1, 16 }
  0x2b   : > { %432 = vrot.lane.b32.xlu1 %v357_v45, %s1766_s21  ;;  %v405_v54 = vsel %vm333_vm1, %v400_v47, %v404_v41  ;;  %v630_v61 = vshll.u32 %v1918_v36, 16  ;;  %v625_v63 = vrot.slane %v623_v53, 1  ;;  %v628_v8 = vshrl.u32 %v1918_v36, 16  ;;  %v1972_v37 = vld [vmem:[%s1871_s10 + $0x50] ss:$0 sps:$4 sm:$0x11]  }
  0x2c   : > { %430 = vrot.lane.b32.xlu0 %v345_v46, %s1766_s21  ;;  %v388_v59 = vor.u32 %v387_v50, %v383_v40  ;;  %v572_v3 = vrot.slane %v570_v56, 1  ;;  %v577_v7 = vrot.slane %v575_v57, 1  ;;  %v582_v10 = vshll.u32 %v1930_v52, 16  ;;  %v1980_v40 = vld [vmem:[%s1871_s10 + $0x24] sm:$0xff]  }
  0x2d   : > { %v621_v12 = vor.u32 %v620_v55, %v616_v5  ;;  %v632_v13 = vrot.slane %v630_v61, 1  ;;  %v635_v14 = vshll.u32 %v1631_v58, 16  ;;  %v580_v16 = vshrl.u32 %v1930_v52, 16  ;;  %v1994_v48 = vld [vmem:[%s1871_s10 + $0x5c] ss:$0 sps:$4 sm:$0x11]  }
  0x2e   : > { %v393_v6 = vsel %vm333_vm1, %v388_v59, %v392_v51  ;;  %v573_v15 = vor.u32 %v572_v3, %v568_v60  ;;  %v584_v17 = vrot.slane %v582_v10, 1  ;;  %v587_v18 = vshll.u32 %v1632_v62, 16  ;;  %v2001_v53 = vld [vmem:[%s1871_s10 + $0x2c] ss:$0 sps:$4 sm:$0x11]   ;;  %v2011_v59 = vld [vmem:[%s1871_s10 + $0x18] sm:$0xff]  }
  0x2f   : > { %440 = vrot.lane.b32.xlu1 %v405_v54, %s1766_s21  ;;  %v626_v19 = vsel %vm333_vm1, %v621_v12, %v625_v63  ;;  %v633_v20 = vor.u32 %v632_v13, %v628_v8  ;;  %v637_v21 = vrot.slane %v635_v14, 1  ;;  %v691_v25 = vrot.slane %v1874_v0, 1  ;;  %v2004_v54 = vld [vmem:[%s1871_s10 + $0x48] sm:$0xff]  }
  0x30   : > { %438 = vrot.lane.b32.xlu0 %v393_v6, %s1766_s21  ;;  %v578_v5 = vsel %vm333_vm1, %v573_v15, %v577_v7  ;;  %v585_v22 = vor.u32 %v584_v17, %v580_v16  ;;  %v589_v23 = vrot.slane %v587_v18, 1  ;;  %v692_v26 = vrot.slane %v1629_v44, 1  ;;  %v2018_v7 = vld [vmem:[%s1871_s10 + $0x50] ss:$0 sps:$4 sm:$0x11]  }
  0x31   : > { %v638_v24 = vsel %vm333_vm1, %v633_v20, %v637_v21  ;;  %v679_v28 = vrot.slane %v1877_v1, 1  ;;  %v680_v29 = vrot.slane %v1630_v49, 1  ;;  %v694_v32 = vrot.slane %v1918_v36, 1  ;;  %v1969_v1 = vld [vmem:[%s1871_s10 + $0x18] sm:$0xff]  }
  0x32   : > { %v590_v27 = vsel %vm333_vm1, %v585_v22, %v589_v23  ;;  %v693_v31 = vsel %vm446_vm0, %v691_v25, %v692_v26  ;;  %v695_v0 = vrot.slane %v1631_v58, 1  ;;  %v682_v34 = vrot.slane %v1930_v52, 1  ;;  %v2028_v17 = vld [vmem:[%s1871_s10 + $0x20] ss:$0 sps:$4 sm:$0x11]   ;;  %v2037_v22 = vld [vmem:[%s1871_s10 + $0x54] sm:$0xff]  }
  0x33   : > { %537 = vrot.lane.b32.xlu1 %v1918_v36, %s1764_s11  ;;  %v681_v33 = vsel %vm446_vm0, %v679_v28, %v680_v29  ;;  %v683_v35 = vrot.slane %v1632_v62, 1  ;;  %v850_v39 = vshll.u32 %v1960_v30, 16  ;;  %v1983_v36 = vld [vmem:[%s1871_s10 + $0x20] ss:$0 sps:$4 sm:$0x11]   ;;  %v802_v43 = vshll.u32 %v1969_v1, 16 }
  0x34   : > { %529 = vrot.lane.b32.xlu0 %v1930_v52, %s1764_s11  ;;  %v696_v41 = vsel %vm446_vm0, %v694_v32, %v695_v0  ;;  %v848_v44 = vshrl.u32 %v1960_v30, 16  ;;  %v855_v46 = vshll.u32 %v1972_v37, 16  ;;  %v807_v47 = vshll.u32 %v1983_v36, 16  ;;  %v2050_v32 = vld [vmem:[%s1871_s10 + $0x5c] ss:$0 sps:$4 sm:$0x11]  }
  0x35   : > { %v684_v42 = vsel %vm446_vm0, %v682_v34, %v683_v35  ;;  %v852_v45 = vrot.slane %v850_v39, 1  ;;  %v862_v49 = vshll.u32 %v1975_v38, 16  ;;  %v814_v50 = vshll.u32 %v1980_v40, 16 }
  0x36   : > { %v800_v51 = vshrl.u32 %v1969_v1, 16  ;;  %v804_v52 = vrot.slane %v802_v43, 1  ;;  %v857_v56 = vrot.slane %v855_v46, 1  ;;  %v860_v57 = vshrl.u32 %v1975_v38, 16  ;;  %v1666_v43 = vld [vmem:[%s2355_s1 + $0x8] sm:$0xff]  }
  0x37   : > { %671 = vrot.lane.b32.xlu1 %v626_v19, %s1767_s24  ;;  %v853_v55 = vor.u32 %v852_v45, %v848_v44  ;;  %v812_v58 = vshrl.u32 %v1980_v40, 16  ;;  %v809_v60 = vrot.slane %v807_v47, 1  ;;  %v864_v61 = vrot.slane %v862_v49, 1 }
  0x38   : > { %663 = vrot.lane.b32.xlu0 %v578_v5, %s1767_s24  ;;  %v867_v62 = vshll.u32 %v1994_v48, 16  ;;  %v816_v63 = vrot.slane %v814_v50, 1  ;;  %v805_v3 = vor.u32 %v804_v52, %v800_v51  ;;  %v819_v6 = vshll.u32 %v2001_v53, 16 }
  0x39   : > { %v858_v8 = vsel %vm333_vm1, %v853_v55, %v857_v56  ;;  %v865_v10 = vor.u32 %v864_v61, %v860_v57  ;;  %v409_v13 = vshll.u32 %v2004_v54, 16  ;;  %v361_v18 = vshll.u32 %v2011_v59, 16 }
  0x3a   : > { %v869_v12 = vrot.slane %v867_v62, 1  ;;  %v810_v14 = vsel %vm333_vm1, %v805_v3, %v809_v60  ;;  %v817_v15 = vor.u32 %v816_v63, %v812_v58  ;;  %v821_v16 = vrot.slane %v819_v6, 1 }
  0x3b   : > { %673 = vrot.lane.b32.xlu1 %v638_v24, %s1767_s24  ;;  %v923_v19 = vrot.slane %v1960_v30, 1  ;;  %v924_v20 = vrot.slane %v1972_v37, 1  ;;  %v911_v21 = vrot.slane %v1969_v1, 1  ;;  %v414_v5 = vshll.u32 %v2018_v7, 16  ;;  %v1665_v37 = vld [vmem:[%s2355_s1] sm:$0xff]  }
  0x3c   : > { %665 = vrot.lane.b32.xlu0 %v590_v27, %s1767_s24  ;;  %v870_v23 = vsel %vm333_vm1, %v865_v10, %v869_v12  ;;  %v912_v24 = vrot.slane %v1983_v36, 1  ;;  %v407_v25 = vshrl.u32 %v2004_v54, 16  ;;  %v411_v26 = vrot.slane %v409_v13, 1  ;;  %1506 = vmatprep.subr.bf16.mxu0 %v1665_v37  ;;  %v1667_v12 = vld [vmem:[%s2355_s1 + $0x10] ss:$0 sps:$4 sm:$0x33]  }
  0x3d   : > { %v822_v27 = vsel %vm333_vm1, %v817_v15, %v821_v16  ;;  %v359_v28 = vshrl.u32 %v2011_v59, 16  ;;  %v363_v29 = vrot.slane %v361_v18, 1  ;;  %v416_v0 = vrot.slane %v414_v5, 1  ;;  %1528 = vmatprep.subr.bf16.mxu1 %v1665_v37  ;;  %1507 = vmatpush3.bf16.msra.mxu0 %v1665_v37  ;;  %v2100_v15 = vld [vmem:[%s1871_s10 + $0x54] sm:$0xff]   ;;  %v1651_v5 = vld [vmem:[%s1871_s10 + $0x60] sm:$0xff]  }
  0x3e   : > { %v925_v34 = vsel %vm446_vm0, %v923_v19, %v924_v20  ;;  %v412_v35 = vor.u32 %v411_v26, %v407_v25  ;;  %v913_v39 = vsel %vm446_vm0, %v911_v21, %v912_v24  ;;  %v926_v44 = vrot.slane %v1975_v38, 1  ;;  %1531 = vmatpush3.bf16.msra.mxu1 %v1665_v37  ;;  %1508 = vmatprep.subr.bf16.mxu0 %v1666_v43  ;;  %v2106_v19 = vld [vmem:[%s1871_s10 + $0x24] sm:$0xff]   ;;  %v1652_v26 = vld [vmem:[%s1871_s10 + $0x30] sm:$0xff]   ;;  %v1656_v37 = vld [vmem:[%s1871_s10 + $0x38] ss:$0 sps:$4 sm:$0x11]  }
  0x3f   : > { %711 = vrot.lane.b32.xlu1 %v693_v31, %s1768_s27  ;;  %v2047_v31 = vld [vmem:[%s1871_s10 + $0x24] sm:$0xff]   ;;  %v364_v36 = vor.u32 %v363_v29, %v359_v28  ;;  %v927_v45 = vrot.slane %v1994_v48, 1  ;;  %v914_v46 = vrot.slane %v1980_v40, 1  ;;  %v915_v47 = vrot.slane %v2001_v53, 1  ;;  %1529 = vmatprep.subr.bf16.mxu1 %v1666_v43 }
  0x40   : > { %703 = vrot.lane.b32.xlu0 %v681_v33, %s1768_s27  ;;  %v421_v33 = vshll.u32 %v2037_v22, 16  ;;  %v417_v49 = vsel %vm333_vm1, %v412_v35, %v416_v0  ;;  %v419_v50 = vshrl.u32 %v2037_v22, 16  ;;  %v426_v52 = vshll.u32 %v2050_v32, 16 }
  0x41   : > { %1509 = vmatpush3.bf16.msra.mxu0 %v1666_v43  ;;  %v928_v53 = vsel %vm446_vm0, %v926_v44, %v927_v45  ;;  %v916_v58 = vsel %vm446_vm0, %v914_v46, %v915_v47  ;;  %v465_v63 = vrot.slane %v2004_v54, 1  ;;  %v466_v3 = vrot.slane %v2018_v7, 1 }
  0x42   : > { %v423_v51 = vrot.slane %v421_v33, 1  ;;  %v428_v57 = vrot.slane %v426_v52, 1  ;;  %1532 = vmatpush3.bf16.msra.mxu1 %v1666_v43  ;;  %v454_v10 = vrot.slane %v2028_v17, 1  ;;  %v469_v7 = vrot.slane %v2050_v32, 1  ;;  %1534 = vmatprep.subr.msk.bf16.mxu0 %vm1131_vm2, %v1667_v12 }
  0x43   : > { %713 = vrot.lane.b32.xlu1 %v696_v41, %s1768_s27  ;;  %v467_v13 = vsel %vm446_vm0, %v465_v63, %v466_v3  ;;  %1535 = vmatprep.subr.msk.bf16.mxu1 %vm1131_vm2, %v1667_v12  ;;  %v1133_v20 = vsel %vm1131_vm2, %v1667_v12, 0  ;;  %v642_v24 = vshll.u32 %v2100_v15, 16  ;;  %v594_v28 = vshll.u32 %v2106_v19, 16  ;;  %v1655_v33 = vld [vmem:[%s1871_s10 + $0x68] ss:$0 sps:$4 sm:$0x11]  }
  0x44   : > { %705 = vrot.lane.b32.xlu0 %v684_v42, %s1768_s27  ;;  %v373_v42 = vshll.u32 %v2047_v31, 16  ;;  %v424_v56 = vor.u32 %v423_v51, %v419_v50  ;;  %v640_v29 = vshrl.u32 %v2100_v15, 16  ;;  %v659_v45 = vshll.u32 %v1655_v33, 16 }
  0x45   : > { %1511 = vmatpush3.bf16.msra.mxu0 %v1133_v20  ;;  %v644_v32 = vrot.slane %v642_v24, 1  ;;  %v596_v35 = vrot.slane %v594_v28, 1  ;;  %v611_v50 = vshll.u32 %v1656_v37, 16  ;;  %v700_v63 = vrot.slane %v1651_v5, 1 }
  0x46   : > { %v375_v48 = vrot.slane %v373_v42, 1  ;;  %v429_v62 = vsel %vm333_vm1, %v424_v56, %v428_v57  ;;  %1533 = vmatpush3.bf16.msra.mxu1 %v1133_v20  ;;  %v697_v56 = vrot.slane %v2100_v15, 1  ;;  %v701_v3 = vrot.slane %v1655_v33, 1 }
  0x47   : > { %767 = vrot.lane.b32.xlu1 %v1960_v30, %s1769_s28  ;;  %v366_v30 = vshll.u32 %v2028_v17, 16  ;;  %v456_v17 = vrot.slane %v2047_v31, 1  ;;  %v645_v42 = vor.u32 %v644_v32, %v640_v29  ;;  %v689_v12 = vrot.slane %v1656_v37, 1  ;;  %v1664_v29 = vld [vmem:[%s1871_s10 + $0x44] ss:$0 sps:$4 sm:$0x11]  }
  0x48   : > { %759 = vrot.lane.b32.xlu0 %v1969_v1, %s1769_s28  ;;  %v2057_v1 = vld [vmem:[%s1871_s10 + $0x2c] ss:$0 sps:$4 sm:$0x11]  }
  0x49   : > { %v368_v41 = vrot.slane %v366_v30, 1  ;;  %v457_v18 = vrot.slane %v2057_v1, 1  ;;  %v592_v30 = vshrl.u32 %v2106_v19, 16 }
  0x4b   : > { %769 = vrot.lane.b32.xlu1 %v1975_v38, %s1769_s28  ;;  %v369_v55 = vsel %vm333_vm1, %v364_v36, %v368_v41  ;;  %v371_v38 = vshrl.u32 %v2047_v31, 16  ;;  %v458_v25 = vsel %vm446_vm0, %v456_v17, %v457_v18  ;;  %v652_v36 = vshrl.u32 %v1651_v5, 16  ;;  %v1660_v18 = vld [vmem:[%s1871_s10 + $0x3c] sm:$0xff]  }
  0x4c   : > { %761 = vrot.lane.b32.xlu0 %v1980_v40, %s1769_s28  ;;  %v378_v40 = vshll.u32 %v2057_v1, 16  ;;  %v604_v41 = vshrl.u32 %v1652_v26, 16  ;;  %v597_v46 = vor.u32 %v596_v35, %v592_v30  ;;  %v838_v30 = vshll.u32 %v1660_v18, 16 }
  0x4d   : > { %v376_v60 = vor.u32 %v375_v48, %v371_v38 }
  0x4e   : > { %v380_v61 = vrot.slane %v378_v40, 1  ;;  %v613_v40 = vrot.slane %v611_v50, 1 }
  0x4f   : > { %903 = vrot.lane.b32.xlu1 %v858_v8, %s1770_s29  ;;  %v453_v8 = vrot.slane %v2011_v59, 1 }
  0x50   : > { %895 = vrot.lane.b32.xlu0 %v810_v14, %s1770_s29  ;;  %v381_v6 = vsel %vm333_vm1, %v376_v60, %v380_v61  ;;  %v468_v14 = vrot.slane %v2037_v22, 1  ;;  %v685_v60 = vrot.slane %v2106_v19, 1 }
  0x51   : > { %v455_v16 = vsel %vm446_vm0, %v453_v8, %v454_v10  ;;  %v688_v10 = vrot.slane %v1652_v26, 1 }
  0x52   : > { %v470_v21 = vsel %vm446_vm0, %v468_v14, %v469_v7  ;;  %v702_v14 = vsel %vm446_vm0, %v700_v63, %v701_v3  ;;  %v2148_v7 = vld [vmem:[%s1871_s10 + $0x6c] sm:$0xff]  }
  0x53   : > { %905 = vrot.lane.b32.xlu1 %v870_v23, %s1770_s29  ;;  %v1653_v23 = vld [vmem:[%s1871_s10 + $0x5c] ss:$0 sps:$4 sm:$0x11]   ;;  %v690_v17 = vsel %vm446_vm0, %v688_v10, %v689_v12  ;;  %v884_v32 = vshrl.u32 %v2148_v7, 16 }
  0x54   : > { %897 = vrot.lane.b32.xlu0 %v822_v27, %s1770_s29  ;;  %v1654_v27 = vld [vmem:[%s1871_s10 + $0x2c] ss:$0 sps:$4 sm:$0x11]   ;;  %v647_v0 = vshll.u32 %v1653_v23, 16  ;;  %v698_v57 = vrot.slane %v1653_v23, 1 }
  0x55   : > { %v599_v1 = vshll.u32 %v1654_v27, 16  ;;  %v686_v61 = vrot.slane %v1654_v27, 1 }
  0x56   : > { %v649_v43 = vrot.slane %v647_v0, 1  ;;  %v836_v0 = vshrl.u32 %v1660_v18, 16 }
  0x57   : > { %943 = vrot.lane.b32.xlu1 %v925_v34, %s1771_s8  ;;  %v654_v34 = vshll.u32 %v1651_v5, 16  ;;  %v601_v47 = vrot.slane %v599_v1, 1  ;;  %v687_v8 = vsel %vm446_vm0, %v685_v60, %v686_v61  ;;  %v920_v61 = vrot.slane %v1660_v18, 1 }
  0x58   : > { %935 = vrot.lane.b32.xlu0 %v913_v39, %s1771_s8  ;;  %v606_v39 = vshll.u32 %v1652_v26, 16  ;;  %v650_v51 = vsel %vm333_vm1, %v645_v42, %v649_v43 }
  0x59   : > { %v656_v44 = vrot.slane %v654_v34, 1  ;;  %v602_v38 = vsel %vm333_vm1, %v597_v46, %v601_v47 }
  0x5b   : > { %442 = vrot.lane.b32.xlu1 %v417_v49, %s1766_s21  ;;  %v608_v49 = vrot.slane %v606_v39, 1  ;;  %v657_v52 = vor.u32 %v656_v44, %v652_v36  ;;  %v840_v36 = vrot.slane %v838_v30, 1 }
  0x5c   : > { %434 = vrot.lane.b32.xlu0 %v369_v55, %s1766_s21  ;;  %v661_v55 = vrot.slane %v659_v45, 1 }
  0x5d   : > { %v609_v48 = vor.u32 %v608_v49, %v604_v41  ;;  %v843_v41 = vshll.u32 %v1664_v29, 16  ;;  %v841_v46 = vor.u32 %v840_v36, %v836_v0 }
  0x5f   : > { %945 = vrot.lane.b32.xlu1 %v928_v53, %s1771_s8  ;;  %v662_v53 = vsel %vm333_vm1, %v657_v52, %v661_v55  ;;  %v845_v47 = vrot.slane %v843_v41, 1 }
  0x60   : > { %937 = vrot.lane.b32.xlu0 %v916_v58, %s1771_s8  ;;  %v614_v58 = vsel %vm333_vm1, %v609_v48, %v613_v40 }
  0x63   : > { %444 = vrot.lane.b32.xlu1 %v429_v62, %s1766_s21  ;;  %v699_v62 = vsel %vm446_vm0, %v697_v56, %v698_v57  ;;  %v932_v57 = vrot.slane %v2148_v7, 1 }
  0x64   : > { %436 = vrot.lane.b32.xlu0 %v381_v6, %s1766_s21  ;;  %v1657_v6 = vld [vmem:[%s1871_s10 + $0x60] sm:$0xff]  }
  0x65   : > { %v929_v52 = vrot.slane %v1657_v6, 1 }
  0x67   : > { %483 = vrot.lane.b32.xlu1 %v467_v13, %s1765_s20  ;;  %v1658_v13 = vld [vmem:[%s1871_s10 + $0x30] sm:$0xff]  }
  0x68   : > { %475 = vrot.lane.b32.xlu0 %v455_v16, %s1765_s20  ;;  %v874_v16 = vshll.u32 %v1657_v6, 16  ;;  %v826_v20 = vshll.u32 %v1658_v13, 16  ;;  %v917_v48 = vrot.slane %v1658_v13, 1 }
  0x6a   : > { %v876_v23 = vrot.slane %v874_v16, 1  ;;  %v828_v27 = vrot.slane %v826_v20, 1 }
  0x6b   : > { %485 = vrot.lane.b32.xlu1 %v470_v21, %s1765_s20  ;;  %v872_v21 = vshrl.u32 %v1657_v6, 16 }
  0x6c   : > { %477 = vrot.lane.b32.xlu0 %v458_v25, %s1765_s20  ;;  %v1663_v25 = vld [vmem:[%s1871_s10 + $0x74] ss:$0 sps:$4 sm:$0x11]  }
  0x6d   : > { %v877_v33 = vor.u32 %v876_v23, %v872_v21  ;;  %v891_v1 = vshll.u32 %v1663_v25, 16 }
  0x6f   : > { %539 = vrot.lane.b32.xlu1 %v2100_v15, %s1764_s11  ;;  %v1661_v15 = vld [vmem:[%s1871_s10 + $0x68] ss:$0 sps:$4 sm:$0x11]   ;;  %v893_v44 = vrot.slane %v891_v1, 1 }
  0x70   : > { %531 = vrot.lane.b32.xlu0 %v2106_v19, %s1764_s11  ;;  %v1662_v19 = vld [vmem:[%s1871_s10 + $0x38] ss:$0 sps:$4 sm:$0x11]   ;;  %v879_v24 = vshll.u32 %v1661_v15, 16  ;;  %v930_v55 = vrot.slane %v1661_v15, 1  ;;  %s175_s10 = sand.u32 1, %s1738_s13  }
  0x71   : > { %v831_v28 = vshll.u32 %v1662_v19, 16  ;;  %v918_v40 = vrot.slane %v1662_v19, 1  ;;  %s2301_s9 = scalar_lea.sflag [#allocation3], %s175_s10 }
  0x72   : > { %v881_v34 = vrot.slane %v879_v24, 1  ;;  %v931_v56 = vsel %vm446_vm0, %v929_v52, %v930_v55 }
  0x73   : > { %541 = vrot.lane.b32.xlu1 %v1651_v5, %s1764_s11  ;;  %v824_v5 = vshrl.u32 %v1658_v13, 16  ;;  %v833_v39 = vrot.slane %v831_v28, 1  ;;  %v919_v60 = vsel %vm446_vm0, %v917_v48, %v918_v40 }
  0x74   : > { %533 = vrot.lane.b32.xlu0 %v1652_v26, %s1764_s11  ;;  %v886_v26 = vshll.u32 %v2148_v7, 16  ;;  %v882_v42 = vsel %vm333_vm1, %v877_v33, %v881_v34  ;;  %s1772_s11 = smov [#allocation2]  }
  0x75   : > { %v829_v37 = vor.u32 %v828_v27, %v824_v5  ;;  %s1672_s21 = sshll.u32 %s1772_s11, 4  ;;  %s1673_s21 = int_to_ptr.vmem [resolvable:$false] %s1672_s21 }
  0x76   : > { %v888_v35 = vrot.slane %v886_v26, 1 }
  0x77   : > { %675 = vrot.lane.b32.xlu1 %v650_v51, %s1767_s24  ;;  %v834_v45 = vsel %vm333_vm1, %v829_v37, %v833_v39 }
  0x78   : > { %667 = vrot.lane.b32.xlu0 %v602_v38, %s1767_s24  ;;  %v889_v43 = vor.u32 %v888_v35, %v884_v32  ;;  %v846_v38 = vsel %vm333_vm1, %v841_v46, %v845_v47 }
  0x7a   : > { %v894_v51 = vsel %vm333_vm1, %v889_v43, %v893_v44 }
  0x7b   : > { %677 = vrot.lane.b32.xlu1 %v662_v53, %s1767_s24 }
  0x7c   : > { %669 = vrot.lane.b32.xlu0 %v614_v58, %s1767_s24  ;;  %v933_v58 = vrot.slane %v1663_v25, 1  ;;  %s1371_s24 = sshll.u32 %s175_s10, 7 }
  0x7f   : > { %715 = vrot.lane.b32.xlu1 %v699_v62, %s1768_s27  ;;  %v921_v62 = vrot.slane %v1664_v29, 1 }
  0x80   : > { %707 = vrot.lane.b32.xlu0 %v687_v8, %s1768_s27 }
  0x81   : > { %v922_v8 = vsel %vm446_vm0, %v920_v61, %v921_v62 }
  0x83   : > { %717 = vrot.lane.b32.xlu1 %v702_v14, %s1768_s27 }
  0x84   : > { %709 = vrot.lane.b32.xlu0 %v690_v17, %s1768_s27  ;;  %s2268_s27 = scalar_lea.vmem [#allocation2], %s1371_s24  ;;  %s1674_s24 = scalar_lea.vmem %s1673_s21, 4096 }
  0x87   : > { %771 = vrot.lane.b32.xlu1 %v1657_v6, %s1769_s28  ;;  %v934_v6 = vsel %vm446_vm0, %v932_v57, %v933_v58 }
  0x88   : > { %763 = vrot.lane.b32.xlu0 %v1658_v13, %s1769_s28 }
  0x8b   : > { %773 = vrot.lane.b32.xlu1 %v2148_v7, %s1769_s28 }
  0x8c   : > { %765 = vrot.lane.b32.xlu0 %v1660_v18, %s1769_s28  ;;  %s1489_s28 = sshll.u32 %s1746_s15, 4 }
  0x8f   : > { %907 = vrot.lane.b32.xlu1 %v882_v42, %s1770_s29 }
  0x90   : > { %899 = vrot.lane.b32.xlu0 %v834_v45, %s1770_s29 }
  0x91   : > { %v536_v49 = vpop.permute.xlu1 %535  ;;  %v528_v50 = vpop.permute.xlu0 %527 }
  0x93   : > { %909 = vrot.lane.b32.xlu1 %v894_v51, %s1770_s29 }
  0x94   : > { %901 = vrot.lane.b32.xlu0 %v846_v38, %s1770_s29  ;;  %s1490_s29 = sshll.u32 %s1750_s16, 5  ;;  %s1280_s16 = sshll.u32 %s2268_s27, 4  ;;  %s2294_s16 = int_to_ptr.vmem [resolvable:$true] %s1280_s16 }
  0x95   : > { %v480_v53 = vpop.permute.xlu1 %479  ;;  %s2280_s5 = sadd.s32 %s1490_s29, %s1489_s28  ;;  %s1668_s4 = scalar_lea.vmem %s2294_s16, 2048 }
  0x96   : > { %v472_v63 = vpop.permute.xlu0 %471  ;;  %s1491_s15 = sshll.u32 %s2280_s5, 7  ;;  %p1669_p13 = scmp.ne.s32.totalorder %s2294_s16, %s1668_s4 }
  0x97   : > { %947 = vrot.lane.b32.xlu1 %v931_v56, %s1771_s8  ;;  %p1675_p2 = scmp.lt.s32.totalorder %s2294_s16, %s1673_s21  ;;  %p1676_p4 = scmp.lt.s32.totalorder %s1674_s24, %s1668_s4 }
  0x98   : > { %939 = vrot.lane.b32.xlu0 %v919_v60, %s1771_s8  ;;  %p1670_p0 = pnand %p1669_p13, %p1845_p3 }
  0x99   : > { %v482_v3 = vpop.permute.xlu1 %481  ;;  %p1677_p5 = por %p1676_p4, %p1675_p2 }
  0x9a   : > { %v474_v10 = vpop.permute.xlu0 %473  ;;  %p1671_p1 = pneg %p1670_p0 }
  0x9b   : > { %949 = vrot.lane.b32.xlu1 %v934_v6, %s1771_s8 }
  0x9c   : > { %941 = vrot.lane.b32.xlu0 %v922_v8, %s1771_s8  ;;  %s2290_s8 = scalar_lea.hbm %s2357_s3, %s1491_s15  ;;  %p1678_p6 = pnand %p1677_p5, %p1671_p1 }
  0x9d   : > { %v433_v12 = vpop.permute.xlu1 %432 }
  0x9e   : > { %v431_v13 = vpop.permute.xlu0 %430  ;;  %v955_v47 = vsel %vm951_vm3, %v1898_v11, %v433_v12 }
  0x9f   : > { %v953_v30 = vsel %vm951_vm3, %v1888_v4, %v431_v13  ;;  %v972_v38 = vsel %vm968_vm4, %v955_v47, %v474_v10 }
  0xa0   : > { %v970_v34 = vsel %vm968_vm4, %v953_v30, %v472_v63 }
  0xa1   : > { %v441_v14 = vpop.permute.xlu1 %440 }
  0xa2   : > { %v439_v7 = vpop.permute.xlu0 %438  ;;  %v963_v43 = vsel %vm951_vm3, %v1894_v9, %v441_v14 }
  0xa3   : > { %v961_v29 = vsel %vm951_vm3, %v1884_v2, %v439_v7  ;;  %v987_v2 = vsel %vm985_vm5, %v970_v34, %v528_v50  ;;  %v980_v55 = vsel %vm968_vm4, %v963_v43, %v482_v3 }
  0xa4   : > { %v978_v0 = vsel %vm968_vm4, %v961_v29, %v480_v53 }
  0xa5   : > { %v538_v15 = vpop.permute.xlu1 %537  ;;  %v995_v35 = vsel %vm985_vm5, %v978_v0, %v536_v49 }
  0xa6   : > { %v530_v16 = vpop.permute.xlu0 %529  ;;  %v997_v9 = vsel %vm985_vm5, %v980_v55, %v538_v15 }
  0xa7   : > { %v989_v11 = vsel %vm985_vm5, %v972_v38, %v530_v16 }
  0xa9   : > { %v672_v17 = vpop.permute.xlu1 %671 }
  0xaa   : > { %v664_v18 = vpop.permute.xlu0 %663  ;;  %v1012_v37 = vsel %vm1002_vm6, %v995_v35, %v672_v17 }
  0xab   : > { %v1004_v4 = vsel %vm1002_vm6, %v987_v2, %v664_v18 }
  0xad   : > { %v674_v19 = vpop.permute.xlu1 %673 }
  0xae   : > { %v666_v20 = vpop.permute.xlu0 %665  ;;  %v1014_v40 = vsel %vm1002_vm6, %v997_v9, %v674_v19 }
  0xaf   : > { %v1006_v56 = vsel %vm1002_vm6, %v989_v11, %v666_v20 }
  0xb1   : > { %v712_v21 = vpop.permute.xlu1 %711 }
  0xb2   : > { %v704_v5 = vpop.permute.xlu0 %703  ;;  %v1029_v36 = vsel %vm1019_vm7, %v1012_v37, %v712_v21 }
  0xb3   : > { %v1021_v41 = vsel %vm1019_vm7, %v1004_v4, %v704_v5 }
  0xb5   : > { %v714_v23 = vpop.permute.xlu1 %713 }
  0xb6   : > { %v706_v24 = vpop.permute.xlu0 %705  ;;  %v1031_v57 = vsel %vm1019_vm7, %v1014_v40, %v714_v23 }
  0xb7   : > { %v1023_v58 = vsel %vm1019_vm7, %v1006_v56, %v706_v24 }
  0xb9   : > { %v768_v25 = vpop.permute.xlu1 %767 }
  0xba   : > { %v760_v26 = vpop.permute.xlu0 %759  ;;  %v1046_v42 = vsel %vm1036_vm8, %v1029_v36, %v768_v25 }
  0xbb   : > { %v1038_v44 = vsel %vm1036_vm8, %v1021_v41, %v760_v26 }
  0xbd   : > { %v770_v27 = vpop.permute.xlu1 %769 }
  0xbe   : > { %v762_v28 = vpop.permute.xlu0 %761  ;;  %v1048_v60 = vsel %vm1036_vm8, %v1031_v57, %v770_v27 }
  0xbf   : > { %v1040_v61 = vsel %vm1036_vm8, %v1023_v58, %v762_v28 }
  0xc1   : > { %v904_v32 = vpop.permute.xlu1 %903 }
  0xc2   : > { %v896_v33 = vpop.permute.xlu0 %895  ;;  %v1063_v45 = vsel %vm1053_vm9, %v1046_v42, %v904_v32 }
  0xc3   : > { %v1055_v49 = vsel %vm1053_vm9, %v1038_v44, %v896_v33 }
  0xc5   : > { %v906_v1 = vpop.permute.xlu1 %905 }
  0xc6   : > { %v898_v39 = vpop.permute.xlu0 %897  ;;  %v1065_v62 = vsel %vm1053_vm9, %v1048_v60, %v906_v1 }
  0xc7   : > { %v1057_v3 = vsel %vm1053_vm9, %v1040_v61, %v898_v39 }
  0xc9   : > { %v944_v46 = vpop.permute.xlu1 %943 }
  0xca   : > { %v936_v50 = vpop.permute.xlu0 %935  ;;  %v1080_v51 = vsel %vm1070_vm10, %v1063_v45, %v944_v46 }
  0xcb   : > { %v1072_v52 = vsel %vm1070_vm10, %v1055_v49, %v936_v50  ;;  %1520 = vmatprep.mubr.msk.bf16.mxu1 %vm1114_vm11, %v1080_v51 }
  0xcc   : > { %1512 = vmatprep.mubr.msk.bf16.mxu0 %vm1114_vm11, %v1072_v52 }
  0xcd   : > { %v443_v48 = vpop.permute.xlu1 %442 }
  0xce   : > { %v435_v53 = vpop.permute.xlu0 %434  ;;  %v965_v14 = vsel %vm951_vm3, %v2004_v54, %v443_v48 }
  0xcf   : > { %v957_v15 = vsel %vm951_vm3, %v2011_v59, %v435_v53 }
  0xd1   : > { %v946_v63 = vpop.permute.xlu1 %945 }
  0xd2   : > { %v1082_v6 = vsel %vm1070_vm10, %v1065_v62, %v946_v63  ;;  %v938_v8 = vpop.permute.xlu0 %937 }
  0xd3   : > { %v1074_v10 = vsel %vm1070_vm10, %v1057_v3, %v938_v8  ;;  %1521 = vmatmul.mubr.msk.bf16.vlgmr.msra.gmra.mrb[0].mxu1 %vm1114_vm11, %v1082_v6  ;;  %v1476_v8 = vld [vmem:[%s2356_s2] ss:$0 sm:$0xff] }
  0xd4   : > { %1513 = vmatmul.mubr.msk.bf16.vlgmr.msra.gmra.mrb[0].mxu0 %vm1114_vm11, %v1074_v10 }
  0xd5   : > { %v445_v12 = vpop.permute.xlu1 %444 }
  0xd6   : > { %v437_v13 = vpop.permute.xlu0 %436  ;;  %v967_v19 = vsel %vm951_vm3, %v2037_v22, %v445_v12 }
  0xd7   : > { %v959_v21 = vsel %vm951_vm3, %v2047_v31, %v437_v13 }
  0xd9   : > { %v484_v7 = vpop.permute.xlu1 %483 }
  0xda   : > { %v982_v16 = vsel %vm968_vm4, %v965_v14, %v484_v7  ;;  %v476_v17 = vpop.permute.xlu0 %475 }
  0xdb   : > { %v974_v18 = vsel %vm968_vm4, %v957_v15, %v476_v17 }
  0xdd   : > { %v486_v20 = vpop.permute.xlu1 %485 }
  0xde   : > { %v984_v5 = vsel %vm968_vm4, %v967_v19, %v486_v20  ;;  %v478_v23 = vpop.permute.xlu0 %477 }
  0xdf   : > { %v976_v54 = vsel %vm968_vm4, %v959_v21, %v478_v23 }
  0xe1   : > { %v540_v24 = vpop.permute.xlu1 %539 }
  0xe2   : > { %v532_v25 = vpop.permute.xlu0 %531  ;;  %v999_v39 = vsel %vm985_vm5, %v982_v16, %v540_v24 }
  0xe3   : > { %v991_v36 = vsel %vm985_vm5, %v974_v18, %v532_v25 }
  0xe5   : > { %v542_v59 = vpop.permute.xlu1 %541 }
  0xe6   : > { %v534_v26 = vpop.permute.xlu0 %533  ;;  %v1001_v47 = vsel %vm985_vm5, %v984_v5, %v542_v59 }
  0xe7   : > { %v993_v52 = vsel %vm985_vm5, %v976_v54, %v534_v26 }
  0xe9   : > { %v676_v27 = vpop.permute.xlu1 %675 }
  0xea   : > { %v668_v28 = vpop.permute.xlu0 %667  ;;  %v1016_v41 = vsel %vm1002_vm6, %v999_v39, %v676_v27 }
  0xeb   : > { %v1008_v43 = vsel %vm1002_vm6, %v991_v36, %v668_v28 }
  0xed   : > { %v678_v29 = vpop.permute.xlu1 %677 }
  0xee   : > { %v670_v30 = vpop.permute.xlu0 %669  ;;  %v1018_v55 = vsel %vm1002_vm6, %v1001_v47, %v678_v29 }
  0xef   : > { %v1010_v11 = vsel %vm1002_vm6, %v993_v52, %v670_v30 }
  0xf1   : > { %v716_v32 = vpop.permute.xlu1 %715 }
  0xf2   : > { %v708_v0 = vpop.permute.xlu0 %707  ;;  %v1033_v44 = vsel %vm1019_vm7, %v1016_v41, %v716_v32 }
  0xf3   : > { %v1025_v45 = vsel %vm1019_vm7, %v1008_v43, %v708_v0 }
  0xf5   : > { %v718_v22 = vpop.permute.xlu1 %717 }
  0xf6   : > { %v710_v33 = vpop.permute.xlu0 %709  ;;  %v1035_v40 = vsel %vm1019_vm7, %v1018_v55, %v718_v22 }
  0xf7   : > { %v1027_v56 = vsel %vm1019_vm7, %v1010_v11, %v710_v33 }
  0xf9   : > { %v772_v34 = vpop.permute.xlu1 %771 }
  0xfa   : > { %v764_v35 = vpop.permute.xlu0 %763  ;;  %v1050_v46 = vsel %vm1036_vm8, %v1033_v44, %v772_v34 }
  0xfb   : > { %v1042_v49 = vsel %vm1036_vm8, %v1025_v45, %v764_v35 }
  0xfd   : > { %v774_v31 = vpop.permute.xlu1 %773 }
  0xfe   : > { %v766_v1 = vpop.permute.xlu0 %765  ;;  %v1052_v57 = vsel %vm1036_vm8, %v1035_v40, %v774_v31 }
  0xff   : > { %v1044_v58 = vsel %vm1036_vm8, %v1027_v56, %v766_v1 }
 0x101   : > { %v908_v37 = vpop.permute.xlu1 %907 }
 0x102   : > { %v900_v2 = vpop.permute.xlu0 %899  ;;  %v1067_v50 = vsel %vm1053_vm9, %v1050_v46, %v908_v37 }
 0x103   : > { %v1059_v9 = vsel %vm1053_vm9, %v1042_v49, %v900_v2 }
 0x105   : > { %v910_v4 = vpop.permute.xlu1 %909 }
 0x106   : > { %v902_v42 = vpop.permute.xlu0 %901  ;;  %v1069_v60 = vsel %vm1053_vm9, %v1052_v57, %v910_v4 }
 0x107   : > { %v1061_v62 = vsel %vm1053_vm9, %v1044_v58, %v902_v42 }
 0x109   : > { %v948_v51 = vpop.permute.xlu1 %947 }
 0x10a   : > { %v1084_v38 = vsel %vm1070_vm10, %v1067_v50, %v948_v51  ;;  %v940_v48 = vpop.permute.xlu0 %939 }
 0x10b   : > { %v1076_v53 = vsel %vm1070_vm10, %v1059_v9, %v940_v48  ;;  %1524 = vmatprep.mubr.msk.bf16.mxu1 %vm1114_vm11, %v1084_v38 }
 0x10c   : > { %1516 = vmatprep.mubr.msk.bf16.mxu0 %vm1114_vm11, %v1076_v53 }
 0x10d   : > { %v950_v61 = vpop.permute.xlu1 %949 }
 0x10e   : > { %v1086_v63 = vsel %vm1070_vm10, %v1069_v60, %v950_v61  ;;  %v942_v3 = vpop.permute.xlu0 %941 }
 0x10f   : > { %v1078_v6 = vsel %vm1070_vm10, %v1061_v62, %v942_v3  ;;  %1525 = vmatmul.mubr.msk.bf16.gmra.mrb[4].mxu1 %vm1114_vm11, %v1086_v63 }
 0x110   : > { %1517 = vmatmul.mubr.msk.bf16.gmra.mrb[4].mxu0 %vm1114_vm11, %v1078_v6 }
 0x1a6   : > { %v1522_v10 = vpop.f32.mrb[0].mxu1 }
 0x1a7   : > { %v1514_v12 = vpop.f32.mrb[0].mxu0  ;;  %v1210_v13 = vadd.f32 %v1522_v10, %v1476_v8  ;;  %v1201_v14 = vpop.f32.mrb[1].mxu1 }
 0x1a8   : > { %v1178_v7 = vadd.f32 %v1514_v12, %v1476_v8  ;;  %v1169_v15 = vpop.f32.mrb[1].mxu0  ;;  %v1202_v16 = vadd.f32 %v1476_v8, %v1201_v14  ;;  %v1523_v17 = vpop.f32.mrb[2].mxu1 }
 0x1a9   : > { %v1242_v18 = vmax.f32 %v1210_v13, 0.0  ;;  %v1170_v19 = vadd.f32 %v1476_v8, %v1169_v15  ;;  %v1515_v20 = vpop.f32.mrb[2].mxu0  ;;  %v1213_v21 = vadd.f32 %v1523_v17, %v1476_v8  ;;  %v1204_v5 = vpop.f32.mrb[3].mxu1 }
 0x1aa   : > { %v1234_v23 = vmax.f32 %v1178_v7, 0.0  ;;  %v1240_v54 = vmax.f32 %v1202_v16, 0.0  ;;  %v1181_v24 = vadd.f32 %v1515_v20, %v1476_v8  ;;  %v1172_v25 = vpop.f32.mrb[3].mxu0  ;;  %v1205_v59 = vadd.f32 %v1476_v8, %v1204_v5 }
 0x1ab   : > { %1258 = vst [vmem:[%s2268_s27 + $0x50] sm:$0xff] %v1242_v18  ;;  %v1232_v26 = vmax.f32 %v1170_v19, 0.0  ;;  %v1243_v27 = vmax.f32 %v1213_v21, 0.0  ;;  %v1173_v28 = vadd.f32 %v1476_v8, %v1172_v25 }
 0x1ac   : > { %1250 = vst [vmem:[%s2268_s27 + $0x10] sm:$0xff] %v1234_v23  ;;  %1256 = vst [vmem:[%s2268_s27 + $0x40] sm:$0xff] %v1240_v54  ;;  %v1235_v29 = vmax.f32 %v1181_v24, 0.0  ;;  %v1241_v30 = vmax.f32 %v1205_v59, 0.0 }
 0x1ad   : > { %1248 = vst [vmem:[%s2268_s27] sm:$0xff] %v1232_v26  ;;  %1259 = vst [vmem:[%s2268_s27 + $0x58] sm:$0xff] %v1243_v27  ;;  %v1233_v32 = vmax.f32 %v1173_v28, 0.0 }
 0x1ae   : > { %1251 = vst [vmem:[%s2268_s27 + $0x18] sm:$0xff] %v1235_v29  ;;  %1257 = vst [vmem:[%s2268_s27 + $0x48] sm:$0xff] %v1241_v30 }
 0x1af   : > { %1249 = vst [vmem:[%s2268_s27 + $0x8] sm:$0xff] %v1233_v32 }
 0x1e2   : > { %v1526_v0 = vpop.f32.mrb[4].mxu1 }
 0x1e3   : > { %v1518_v22 = vpop.f32.mrb[4].mxu0  ;;  %v1226_v33 = vadd.f32 %v1526_v0, %v1476_v8  ;;  %v1217_v34 = vpop.f32.mrb[5].mxu1 }
 0x1e4   : > { %v1194_v35 = vadd.f32 %v1518_v22, %v1476_v8  ;;  %v1185_v31 = vpop.f32.mrb[5].mxu0  ;;  %v1218_v1 = vadd.f32 %v1476_v8, %v1217_v34  ;;  %v1527_v37 = vpop.f32.mrb[6].mxu1 }
 0x1e5   : > { %v1246_v2 = vmax.f32 %v1226_v33, 0.0  ;;  %v1186_v39 = vadd.f32 %v1476_v8, %v1185_v31  ;;  %v1519_v4 = vpop.f32.mrb[6].mxu0  ;;  %v1229_v36 = vadd.f32 %v1527_v37, %v1476_v8  ;;  %v1220_v41 = vpop.f32.mrb[7].mxu1 }
 0x1e6   : > { %v1238_v42 = vmax.f32 %v1194_v35, 0.0  ;;  %v1244_v43 = vmax.f32 %v1218_v1, 0.0  ;;  %v1197_v44 = vadd.f32 %v1519_v4, %v1476_v8  ;;  %v1188_v45 = vpop.f32.mrb[7].mxu0  ;;  %v1221_v46 = vadd.f32 %v1476_v8, %v1220_v41 }
 0x1e7   : > { %1262 = vst [vmem:[%s2268_s27 + $0x70] sm:$0xff] %v1246_v2  ;;  %v1236_v47 = vmax.f32 %v1186_v39, 0.0  ;;  %v1247_v49 = vmax.f32 %v1229_v36, 0.0  ;;  %v1189_v50 = vadd.f32 %v1476_v8, %v1188_v45 }
 0x1e8   : > { %1254 = vst [vmem:[%s2268_s27 + $0x30] sm:$0xff] %v1238_v42  ;;  %1260 = vst [vmem:[%s2268_s27 + $0x60] sm:$0xff] %v1244_v43  ;;  %v1239_v51 = vmax.f32 %v1197_v44, 0.0  ;;  %v1245_v52 = vmax.f32 %v1221_v46, 0.0 }
 0x1e9   : > { %1252 = vst [vmem:[%s2268_s27 + $0x20] sm:$0xff] %v1236_v47  ;;  %1263 = vst [vmem:[%s2268_s27 + $0x78] sm:$0xff] %v1247_v49  ;;  %v1237_v55 = vmax.f32 %v1189_v50, 0.0 }
 0x1ea   : > { %1255 = vst [vmem:[%s2268_s27 + $0x38] sm:$0xff] %v1239_v51  ;;  %1261 = vst [vmem:[%s2268_s27 + $0x68] sm:$0xff] %v1245_v52 }
 0x1eb   : > { %1253 = vst [vmem:[%s2268_s27 + $0x28] sm:$0xff] %v1237_v55 }
 0x1ec   : > { %1681 = shalt.err (!%p1678_p6)
}
 0x1ed   : > { %s1682_s10 = scalar_lea.hbm %s2290_s8, 2048  ;;  %s1686_s29 = scalar_lea.hbm %s2357_s3, 8192 }
 0x1ee   : > { %p1683_p7 = scmp.ne.s32.totalorder %s2290_s8, %s1682_s10  ;;  %p1687_p11 = scmp.lt.u32.totalorder %s2290_s8, %s2357_s3 }
 0x1ef   : > { %p1688_p12 = scmp.lt.u32.totalorder %s1686_s29, %s1682_s10  ;;  %p1690_p0 = scmp.lt.u32.totalorder %s1682_s10, %s2290_s8 }
 0x1f0   : > { %p1684_p9 = pnand %p1683_p7, %p1845_p3 }
 0x1f1   : > { %p1689_p13 = por %p1688_p12, %p1687_p11 }
 0x1f2   : > { %p1685_p10 = pneg %p1684_p9 }
 0x1f3   : > { %p1691_p1 = por %p1690_p0, %p1689_p13 }
 0x1f5   : > { %p1692_p2 = pnand %p1691_p1, %p1685_p10 }
 0x1f7   : > { %1695 = shalt.err (!%p1692_p2)
}
 0x1f8   : > { %s1773_s6 = smov 128  }
 0x1f9   : > { %1537 = dma.vmem_to_hbm [thread:$0]  (%p1845_p3), %s2294_s16, 2048, %s2290_s8, %s2301_s9, %s1773_s6, %s1773_s6, %s1765_s20  }
 0x1fa PF: > { %p1543_p4 = scmp.ge.s32.totalorder %s1762_s19, 2  ;;  %s1295_s7 = sand.u32 1, %s1734_s12  }
 0x1fb   : > { %s1296_s4 = scalar_lea.sflag [#allocation3], %s1295_s7 }
 0x1fc   : > { %p1540_p5 = pnand %p1543_p4, %p1854_p8 }
 0x1fe   : > { %1729 = dma.done.wait (!%p1540_p5), %s1296_s4, 2048  }
 0x1ff   : > { %1731 = vsyncadd (!%p1540_p5), %s1296_s4, 4294965248  ;;  %s16_s19 = sadd.s32 1, %s1762_s19   ;;  %s2360_s12 = smov %s1738_s13 }
 0x200   : > { %p13_p6 = scmp.ge.s32.totalorder %s16_s19, 6   ;;  %s2361_s13 = smov %s1742_s14 }
 0x201   : > { %s2362_s14 = smov %s1863_s30  ;;  %s2363_s15 = smov %s1754_s17 }
 0x202   : > { %s2364_s16 = smov %s1758_s18  ;;  %s2365_s17 = smov %s2368_s22 }
 0x203   : > { %s2366_s18 = smov %s2372_s23  ;;  %15 = sbr.rel (!%p13_p6) target bundleno = 5 (0x5), region = 70 }
 0x20a   :  { %1301 = vsyncpa [#allocation3], 1 }
 0x20b   :  { %1303 = vsyncpa [#allocation3 + $0x1], 1 }

</bundles_post_ra>
